<compile_context>
chip_gen: v7x
topology: tpu7x:2x2x1
jax: 0.10.0
libtpu: 0.0.40
codegen_flags: <defaults>
</compile_context>

<pallas_src>
import jax
import jax.numpy as jnp
from jax.experimental import pallas as pl
from jax.experimental.pallas import tpu as pltpu

_LANE = 128
_SMALL_BYTES = 1 << 20  # <= 1 MiB: single full-block fast path


def _cdiv(a, b):
    return -(-a // b)


def _copy_kernel(x_ref, o_ref):
    # Identity copy of one lane/sublane-dense tile.  Pure store -> safe with a
    # masked partial trailing grid block.
    o_ref[...] = x_ref[...]


def _sublane_unit(itemsize):
    # Minimal sublane multiple per dtype width: 8 (32-bit), 16 (16-bit), 32 (8-bit).
    return max(8, 32 // itemsize)


def _tile_budget():
    """Per-generation (max_tile_bytes, vmem_limit_bytes) for the tiled copy."""
    try:
        kind = jax.devices()[0].device_kind.lower()
    except Exception:
        kind = ""
    if "v5" in kind:
        # v5e default scoped VMEM = 16 MiB: 2 MiB * 2 specs * 2 buffers = 8 MiB.
        return 2 * 1024 * 1024, None
    if "v6" in kind:
        # 4 MiB * 4 = 16 MiB, fits the 32 MiB default scoped VMEM, no flags.
        return 4 * 1024 * 1024, None
    if "7" in kind:
        # v7x: larger tiles amortize the ~0.35 us/step overhead at 3.2 TB/s.
        # 8 MiB * 4 = 32 MiB -> raise the scoped limit (48 MiB < 64 MiB physical).
        return 8 * 1024 * 1024, 48 * 1024 * 1024
    # Unknown generation: conservative.
    return 2 * 1024 * 1024, None


def view_flatten(x):
    """Equivalent of PyTorch `x.view(x.size(0), -1)` for a contiguous tensor."""
    B = x.shape[0]
    F = 1
    for d in x.shape[1:]:
        F *= d
    N = B * F
    if N == 0:
        # Zero-size input: nothing to copy; metadata reshape only.
        return jnp.reshape(x, (B, F))

    itemsize = jnp.dtype(x.dtype).itemsize
    sub = _sublane_unit(itemsize)

    # Row-major flatten of trailing dims == torch .view semantics (metadata glue).
    x_1d = jnp.reshape(x, (N,))

    # ---- small-input fast path: one full-array block, pad only to 128 lanes.
    if N * itemsize <= _SMALL_BYTES:
        pad = (-N) % _LANE
        if pad:
            x_1d = jnp.pad(x_1d, (0, pad))
        rows = (N + pad) // _LANE
        x_2d = jnp.reshape(x_1d, (rows, _LANE))
        out_2d = pl.pallas_call(
            _copy_kernel,
            out_shape=jax.ShapeDtypeStruct((rows, _LANE), x.dtype),
            cost_estimate=pl.CostEstimate(
                flops=0, transcendentals=0,
                bytes_accessed=2 * rows * _LANE * itemsize),
        )(x_2d)
        out_1d = jnp.reshape(out_2d, (rows * _LANE,))
        if pad:
            out_1d = out_1d[:N]
        return jnp.reshape(out_1d, (B, F))

    # ---- tiled path: re-tile the whole element count as (rows, TC).
    # Prefer 512 lanes; fall back to 128 when that keeps N exactly divisible
    # (DMA stays fully contiguous either way, 128-lane stores are still
    # unmasked vst).  Only truly ragged N (N % 128 != 0) pays pad + slice.
    if N % (4 * _LANE) == 0:
        TC, pad = 4 * _LANE, 0
    elif N % _LANE == 0:
        TC, pad = _LANE, 0
    else:
        TC = _LANE
        pad = (-N) % TC

    if pad:
        x_1d = jnp.pad(x_1d, (0, pad))
    rows = (N + pad) // TC
    x_2d = jnp.reshape(x_1d, (rows, TC))

    max_tile_bytes, vmem_limit = _tile_budget()
    max_tr = max(sub, (max_tile_bytes // (TC * itemsize)) // sub * sub)
    # Keep >= ~4 grid steps so both v7x TensorCores can stream DMAs.
    tr_steps = max(sub, _cdiv(_cdiv(rows, 4), sub) * sub)
    TR = min(max_tr, tr_steps)

    grid = (_cdiv(rows, TR),)  # partial trailing block is masked by Pallas
    out_2d = pl.pallas_call(
        _copy_kernel,
        out_shape=jax.ShapeDtypeStruct((rows, TC), x.dtype),
        grid_spec=pltpu.PrefetchScalarGridSpec(
            num_scalar_prefetch=0,
            grid=grid,
            in_specs=[pl.BlockSpec((TR, TC), lambda i: (i, 0))],
            out_specs=pl.BlockSpec((TR, TC), lambda i: (i, 0)),
        ),
        compiler_params=pltpu.CompilerParams(
            # Independent output tiles: lets both TensorCores on v7x split the
            # copy; near-zero effect on single-TC v5e/v6e.
            dimension_semantics=("parallel",),
            vmem_limit_bytes=vmem_limit,
        ),
        cost_estimate=pl.CostEstimate(
            flops=0, transcendentals=0,
            bytes_accessed=2 * rows * TC * itemsize),
    )(x_2d)

    out_1d = jnp.reshape(out_2d, (rows * TC,))
    if pad:
        out_1d = out_1d[:N]
    return jnp.reshape(out_1d, (B, F))


if __name__ == "__main__":
    key = jax.random.PRNGKey(0)

    # Primary test: small NCHW input consistent with the module
    # (batch=2, channels=4, 16x16) -> fast path.
    x = jax.random.normal(key, (2, 4, 16, 16), dtype=jnp.float32)
    y = jax.block_until_ready(view_flatten(x))
    y_ref = jnp.reshape(x, (x.shape[0], -1))
    assert y.shape == (2, 4 * 16 * 16), y.shape
    assert y.dtype == x.dtype
    assert bool(jnp.all(y == y_ref))

    # Secondary test: exercises the tiled path with the TC=128 fallback and a
    # masked partial trailing grid block (N % 128 == 0, N % 512 != 0).
    x2 = jax.random.normal(key, (2, 3, 384, 129), dtype=jnp.float32)
    y2 = jax.block_until_ready(view_flatten(x2))
    y2_ref = jnp.reshape(x2, (x2.shape[0], -1))
    assert y2.shape == y2_ref.shape
    assert bool(jnp.all(y2 == y2_ref))

    # Ragged small test: exercises the pad + slice path (N % 128 != 0).
    x3 = jax.random.normal(key, (2, 3, 5, 7), dtype=jnp.float32)
    y3 = jax.block_until_ready(view_flatten(x3))
    y3_ref = jnp.reshape(x3, (x3.shape[0], -1))
    assert y3.shape == y3_ref.shape
    assert bool(jnp.all(y3 == y3_ref))

    print("KERNEL_OK")
</pallas_src>

<mosaic_0001>
module attributes {stable_mosaic.version = 11 : i64} {
  func.func @_copy_kernel(%arg0: memref<16x128xf32, #tpu.memory_space<vmem>>, %arg1: memref<16x128xf32, #tpu.memory_space<vmem>>) attributes {dimension_semantics = [], scalar_prefetch = 0 : i64, scratch_operands = 0 : i64, tpu.core_type = #tpu.core_type<tc>} {
    %c0 = arith.constant 0 : index
    %c0_0 = arith.constant 0 : index
    %0 = vector.load %arg0[%c0, %c0_0] : memref<16x128xf32, #tpu.memory_space<vmem>>, vector<16x128xf32>
    %c0_1 = arith.constant 0 : index
    %c0_2 = arith.constant 0 : index
    %1 = vector.load %arg1[%c0_1, %c0_2] : memref<16x128xf32, #tpu.memory_space<vmem>>, vector<16x128xf32>
    tpu.vector_store %arg1[%c0_1, %c0_2], %0 {strides = array<i32>} : memref<16x128xf32, #tpu.memory_space<vmem>>, vector<16x128xf32>,
    return
  }
}

</mosaic_0001>

<bundles_post_ra>
// kernel: tpu_custom_call.1
= control target key start
LH: loop header
LB: loop body
LE: loop exit
PB: predicated region body
PF: predicated region fallthrough
CT: control target
= control target key end

     0   :  { %6 = vsyncpa [#allocation3], 0  ;;  %s134_s0 = inlined_call_operand.hbm [shape: f32[16,128], index: 0, kind: input, shape index: {}]   ;;  %s135_s1 = inlined_call_operand.hbm [shape: f32[16,128], index: 1, kind: output, shape index: {}]  }
   0x1   :  { %7 = vsyncpa [#allocation4], 0  ;;  %s96_s6 = smov [#allocation2]   ;;  %s48_s10 = scalar_lea.hbm %s134_s0, 256 }
   0x2   :  { %s13_s7 = sshll.u32 %s96_s6, 4  ;;  %p49_p0 = scmp.ne.s32.totalorder %s134_s0, %s48_s10  ;;  %s14_s7 = int_to_ptr.vmem [resolvable:$true] %s13_s7 }
   0x3   :  { %p52_p1 = scmp.lt.u32.totalorder %s48_s10, %s134_s0 }
   0x5   :  { %p54_p2 = pnand %p52_p1, %p49_p0 }
   0x7   :  { %57 = shalt.err (!%p54_p2)
}
   0x8   :  { %s58_s15 = scalar_lea.vmem %s14_s7, 256  ;;  %p63_p4 = scmp.lt.s32.totalorder %s14_s7, %s14_s7 }
   0x9   :  { %p59_p3 = scmp.ne.s32.totalorder %s14_s7, %s58_s15  ;;  %p64_p5 = scmp.lt.s32.totalorder %s58_s15, %s58_s15 }
   0xb   :  { %p65_p6 = por %p64_p5, %p63_p4 }
   0xd   :  { %p66_p7 = pnand %p65_p6, %p59_p3 }
   0xf   :  { %69 = shalt.err (!%p66_p7)
}
  0x10   :  { %s97_s16 = smov 128   ;;  %s98_s17 = smov 8  }
  0x11   :  { %19 = dma.hbm_to_vmem [thread:$0]  %s134_s0, 256, %s14_s7, [#allocation3], %s97_s16, %s97_s16, %s98_s17  }
  0x12   :  { %92 = dma.done.wait [#allocation3], 256  }
  0x13   :  { %93 = vsyncadd [#allocation3], 4294967040  ;;  %s99_s20 = smov [#allocation5]   ;;  %v23_v0 = vld [vmem:[#allocation2] sm:$0xff]  ;;  %v24_v1 = vld [vmem:[#allocation2 + $0x8] sm:$0xff] }
  0x14   :  { %s32_s21 = sshll.u32 %s99_s20, 4  ;;  %25 = vst [vmem:[#allocation5] sm:$0xff] %v23_v0  ;;  %26 = vst [vmem:[#allocation5 + $0x8] sm:$0xff] %v24_v1  ;;  %s33_s21 = int_to_ptr.vmem [resolvable:$true] %s32_s21 }
  0x15   :  { %s70_s22 = scalar_lea.vmem %s33_s21, 256  ;;  %p75_p9 = scmp.lt.s32.totalorder %s33_s21, %s33_s21 }
  0x16   :  { %p71_p8 = scmp.ne.s32.totalorder %s33_s21, %s70_s22  ;;  %p76_p10 = scmp.lt.s32.totalorder %s70_s22, %s70_s22 }
  0x18   :  { %p77_p11 = por %p76_p10, %p75_p9 }
  0x1a   :  { %p78_p12 = pnand %p77_p11, %p71_p8 }
  0x1c   :  { %81 = shalt.err (!%p78_p12)
}
  0x1d   :  { %s82_s0 = scalar_lea.hbm %s135_s1, 256 }
  0x1e   :  { %p83_p13 = scmp.ne.s32.totalorder %s135_s1, %s82_s0  ;;  %p86_p0 = scmp.lt.u32.totalorder %s82_s0, %s135_s1 }
  0x20   :  { %p88_p1 = pnand %p86_p0, %p83_p13 }
  0x22   :  { %91 = shalt.err (!%p88_p1)
}
  0x23   :  { %38 = dma.vmem_to_hbm [thread:$0]  %s33_s21, 256, %s135_s1, [#allocation4], %s97_s16, %s97_s16, %s98_s17  }
  0x24   :  { %94 = dma.done.wait [#allocation4], 256  }
  0x25   :  { %95 = vsyncadd [#allocation4], 4294967040 }
  0x26   :  { %42 = vsyncpa [#allocation3], 1 }
  0x27   :  { %43 = vsyncpa [#allocation4], 1 }

</bundles_post_ra>
